<compile_context>
chip_gen: v7x
topology: tpu7x:2x2x1
jax: 0.10.0
libtpu: 0.0.40
codegen_flags: <defaults>
</compile_context>

<pallas_src>
import jax
import jax.numpy as jnp
from jax.experimental import pallas as pl
from jax.experimental.pallas import tpu as pltpu


_MAX_BLOCK_BYTES = 8 * 1024 * 1024   # cap per-input block size
_MIN_BLOCK_BYTES = 256 * 1024        # floor (degenerate-config guard)


def _cdiv(a, b):
    return -(-a // b)


def _vmem_limit_bytes():
    """Scoped-VMEM limit derived from the chip's physical VMEM capacity."""
    cap = None
    try:
        info = pltpu.get_tpu_info()
        cap = getattr(info, "vmem_capacity_bytes", None)
    except Exception:
        cap = None
    if not cap:
        cap = 64 * 1024 * 1024  # conservative fallback (v7x per-core VMEM)
    # 3/4 of physical, capped at 64 MiB (plenty for this HBM-bound kernel):
    # v5e/v6e (128 MiB) -> 64 MiB, v7x (64 MiB) -> 48 MiB.
    return int(min(cap * 3 // 4, 64 * 1024 * 1024))


def _block_budget_bytes(vmem_limit, elem_bytes):
    """Per-input block budget with honest accounting:
    2 inputs x 2 pipeline buffers (native dtype) + ~5 f32 intermediates."""
    factor = 4 + 5 * max(1, 4 // elem_bytes)   # f32: 9x, bf16: 14x, int8: 24x
    usable = int(vmem_limit * 0.85)            # headroom for compiler scratch
    return max(_MIN_BLOCK_BYTES, min(_MAX_BLOCK_BYTES, usable // factor))


def _largest_divisor_leq(n, cap):
    cap = max(1, min(n, cap))
    for d in range(cap, 0, -1):
        if n % d == 0:
            return d
    return 1


def _choose_tiles(n, c, s_raw, elem_bytes, block_budget):
    """Pick (tile_n, tile_s, s_pad).

    tile_s is a multiple of 8 or the full (padded) S extent; tile_n divides n;
    s_pad % tile_s == 0 so the grid over S is exact (no partial blocks).
    """
    sub_mult = 8 * max(1, 4 // elem_bytes)   # dtype sublane tile (8/16/32)
    lane_row = c * 128 * elem_bytes          # bytes per unit of tile_s (tile_n=1)
    full_row = s_raw * lane_row              # one (1, C, S, 128) slab

    if full_row <= block_budget:
        tile_s = s_raw
        s_pad = s_raw
        tile_n = _largest_divisor_leq(n, block_budget // full_row)
    else:
        tile_n = 1
        budget_s = (block_budget // lane_row) // sub_mult * sub_mult
        budget_s = max(sub_mult, budget_s)
        if budget_s >= s_raw:
            tile_s = s_raw
            s_pad = s_raw
        else:
            tile_s = budget_s
            s_pad = _cdiv(s_raw, tile_s) * tile_s

    # Guarantee >= 2 grid steps (v7x megacore) whenever the tensor allows it.
    if (n // tile_n) * (s_pad // tile_s) < 2:
        if n >= 2:
            tile_n = _largest_divisor_leq(n, n // 2)
        elif s_raw >= 2 * sub_mult:
            tile_s = _cdiv(_cdiv(s_raw, 2), sub_mult) * sub_mult
            s_pad = _cdiv(s_raw, tile_s) * tile_s

    return tile_n, tile_s, s_pad


def _make_partial_kernel(tile_s, hw, needs_mask):
    def kernel(x_ref, t_ref, out_ref):
        # x_ref / t_ref: (TILE_N, C, TILE_S, 128) blocks in native dtype.
        x = x_ref[...].astype(jnp.float32)
        t = t_ref[...].astype(jnp.float32)

        # Numerically-stable softmax over the channel axis (axis=1).  C is a
        # leading axis, so max/sum are elementwise VPU ops across C slabs.
        m = jnp.max(x, axis=1, keepdims=True)
        e = jnp.exp(x - m)
        denom = jnp.sum(e, axis=1, keepdims=True)
        p = e * pl.reciprocal(denom, approx=False)  # exact: keep 1e-5/1e-6 tol

        d = p - t
        dd = d * d

        if needs_mask:
            # Zero the contribution of lane-padded spatial positions.
            j = pl.program_id(1)
            s_idx = jax.lax.broadcasted_iota(jnp.int32, (tile_s, 128), 0)
            l_idx = jax.lax.broadcasted_iota(jnp.int32, (tile_s, 128), 1)
            col = (j * tile_s + s_idx) * 128 + l_idx
            dd = jnp.where((col < hw)[None, None, :, :], dd, 0.0)

        # Un-normalized partial sum, broadcast into this step's private
        # (1,1,8,128) output block; the wrapper reads [..., 0, 0].
        out_ref[...] = jnp.full(out_ref.shape, jnp.sum(dd), dtype=jnp.float32)

    return kernel


def mse_softmax_loss(outputs, targets):
    """outputs, targets: NCHW arrays of identical shape. Returns scalar loss."""
    assert outputs.shape == targets.shape
    n, c, h, w = outputs.shape
    hw = h * w
    s_raw = _cdiv(hw, 128)

    elem_bytes = max(jnp.dtype(outputs.dtype).itemsize,
                     jnp.dtype(targets.dtype).itemsize)
    vmem_limit = _vmem_limit_bytes()
    block_budget = _block_budget_bytes(vmem_limit, elem_bytes)

    tile_n, tile_s, s_pad = _choose_tiles(n, c, s_raw, elem_bytes, block_budget)
    hw_pad = s_pad * 128
    needs_mask = hw_pad != hw

    # Free reshape (no transpose); lane-pad only when H*W is not 128-aligned.
    x = outputs.reshape(n, c, hw)
    t = targets.reshape(n, c, hw)
    if needs_mask:
        pad = ((0, 0), (0, 0), (0, hw_pad - hw))
        x = jnp.pad(x, pad)
        t = jnp.pad(t, pad)
    x = x.reshape(n, c, s_pad, 128)
    t = t.reshape(n, c, s_pad, 128)

    gn = n // tile_n
    gs = s_pad // tile_s

    in_spec = pl.BlockSpec((tile_n, c, tile_s, 128), lambda i, j: (i, 0, j, 0))

    partials = pl.pallas_call(
        _make_partial_kernel(tile_s, hw, needs_mask),
        out_shape=jax.ShapeDtypeStruct((gn, gs, 8, 128), jnp.float32),
        grid_spec=pltpu.PrefetchScalarGridSpec(
            num_scalar_prefetch=0,
            grid=(gn, gs),
            in_specs=[in_spec, in_spec],
            out_specs=pl.BlockSpec((1, 1, 8, 128), lambda i, j: (i, j, 0, 0)),
        ),
        compiler_params=pltpu.CompilerParams(
            dimension_semantics=("parallel", "parallel"),
            vmem_limit_bytes=vmem_limit,
        ),
    )(x, t)

    total = float(n) * float(c) * float(hw)
    return jnp.sum(partials[:, :, 0, 0]) / total


class MSE:
    """Mirror of the PyTorch module's forward (debug print is host-side)."""

    def __init__(self, debug_mode=False):
        self.debug_mode = debug_mode

    def __call__(self, outputs, targets):
        loss = mse_softmax_loss(outputs, targets)
        if self.debug_mode:
            print("MSE loss is:", loss)
        return loss


if __name__ == "__main__":
    key = jax.random.PRNGKey(0)
    k1, k2 = jax.random.split(key)

    # Small NCHW shapes consistent with the module's usage (logits + targets).
    n, c, h, w = 2, 4, 16, 16
    outputs = jax.random.normal(k1, (n, c, h, w), dtype=jnp.float32)
    targets = jax.random.uniform(k2, (n, c, h, w), dtype=jnp.float32)

    loss_fn = MSE(debug_mode=False)
    loss = loss_fn(outputs, targets)
    jax.block_until_ready(loss)

    # Reference check in plain JAX.
    ref = jnp.mean((jax.nn.softmax(outputs, axis=1) - targets) ** 2)
    assert jnp.allclose(loss, ref, rtol=1e-5, atol=1e-6), (loss, ref)

    print("KERNEL_OK")
</pallas_src>

<mosaic_0001>
module attributes {stable_mosaic.version = 11 : i64} {
  func.func @kernel(%arg0: i32, %arg1: i32, %arg2: memref<1x4x2x128xf32, #tpu.memory_space<vmem>>, %arg3: memref<1x4x2x128xf32, #tpu.memory_space<vmem>>, %arg4: memref<1x1x8x128xf32, #tpu.memory_space<vmem>>) attributes {dimension_semantics = [#tpu.dimension_semantics<parallel>, #tpu.dimension_semantics<parallel>], iteration_bounds = array<i64: 2, 1>, scalar_prefetch = 0 : i64, scratch_operands = 0 : i64, tpu.core_type = #tpu.core_type<tc>, window_params = [{transform_indices = @transform_0, window_bounds = array<i64: 1, 4, 2, 128>}, {transform_indices = @transform_1, window_bounds = array<i64: 1, 4, 2, 128>}, {transform_indices = @transform_2, window_bounds = array<i64: 1, 1, 8, 128>}]} {
    %c0 = arith.constant 0 : index
    %c0_0 = arith.constant 0 : index
    %c0_1 = arith.constant 0 : index
    %c0_2 = arith.constant 0 : index
    %0 = vector.load %arg2[%c0, %c0_0, %c0_1, %c0_2] : memref<1x4x2x128xf32, #tpu.memory_space<vmem>>, vector<1x4x2x128xf32>
    %c0_3 = arith.constant 0 : index
    %c0_4 = arith.constant 0 : index
    %c0_5 = arith.constant 0 : index
    %c0_6 = arith.constant 0 : index
    %1 = vector.load %arg3[%c0_3, %c0_4, %c0_5, %c0_6] : memref<1x4x2x128xf32, #tpu.memory_space<vmem>>, vector<1x4x2x128xf32>
    %cst = arith.constant dense<0xFF800000> : vector<1x2x128xf32>
    %2 = vector.multi_reduction <maximumf>, %0, %cst [1] : vector<1x4x2x128xf32> to vector<1x2x128xf32>
    %3 = vector.shape_cast %2 : vector<1x2x128xf32> to vector<1x1x2x128xf32>
    %4 = vector.broadcast %3 : vector<1x1x2x128xf32> to vector<1x4x2x128xf32>
    %5 = arith.subf %0, %4 : vector<1x4x2x128xf32>
    %6 = math.exp %5 : vector<1x4x2x128xf32>
    %cst_7 = arith.constant dense<0.000000e+00> : vector<1x2x128xf32>
    %7 = vector.multi_reduction <add>, %6, %cst_7 [1] : vector<1x4x2x128xf32> to vector<1x2x128xf32>
    %8 = vector.shape_cast %7 : vector<1x2x128xf32> to vector<1x1x2x128xf32>
    %9 = tpu.reciprocal %8 : vector<1x1x2x128xf32> -> vector<1x1x2x128xf32>
    %10 = vector.broadcast %9 : vector<1x1x2x128xf32> to vector<1x4x2x128xf32>
    %11 = arith.mulf %6, %10 : vector<1x4x2x128xf32>
    %12 = arith.subf %11, %1 : vector<1x4x2x128xf32>
    %13 = arith.mulf %12, %12 : vector<1x4x2x128xf32>
    %14 = vector.shape_cast %13 : vector<1x4x2x128xf32> to vector<1x1x4x2x128xf32>
    %cst_8 = arith.constant dense<0.000000e+00> : vector<1xf32>
    %15 = vector.multi_reduction <add>, %14, %cst_8 [1, 2, 3, 4] : vector<1x1x4x2x128xf32> to vector<1xf32>
    %16 = vector.shape_cast %15 : vector<1xf32> to vector<1x1x1x1x1xf32>
    %17 = vector.extract %16[0, 0, 0, 0, 0] : f32 from vector<1x1x1x1x1xf32>
    %18 = vector.broadcast %17 : f32 to vector<1x1x8x128xf32>
    %c0_9 = arith.constant 0 : index
    %c0_10 = arith.constant 0 : index
    %c0_11 = arith.constant 0 : index
    %c0_12 = arith.constant 0 : index
    %19 = vector.load %arg4[%c0_9, %c0_10, %c0_11, %c0_12] : memref<1x1x8x128xf32, #tpu.memory_space<vmem>>, vector<1x1x8x128xf32>
    tpu.vector_store %arg4[%c0_9, %c0_10, %c0_11, %c0_12], %18 {strides = array<i32>} : memref<1x1x8x128xf32, #tpu.memory_space<vmem>>, vector<1x1x8x128xf32>,
    return
  }
  func.func @transform_0(%arg0: i32, %arg1: i32) -> (i32, i32, i32, i32) {
    %c0_i32 = arith.constant 0 : i32
    %c0_i32_0 = arith.constant 0 : i32
    %c0_i32_1 = arith.constant 0 : i32
    return %arg0, %c0_i32, %arg1, %c0_i32_0 : i32, i32, i32, i32
  }
  func.func @transform_1(%arg0: i32, %arg1: i32) -> (i32, i32, i32, i32) {
    %c0_i32 = arith.constant 0 : i32
    %c0_i32_0 = arith.constant 0 : i32
    %c0_i32_1 = arith.constant 0 : i32
    return %arg0, %c0_i32, %arg1, %c0_i32_0 : i32, i32, i32, i32
  }
  func.func @transform_2(%arg0: i32, %arg1: i32) -> (i32, i32, i32, i32) {
    %c0_i32 = arith.constant 0 : i32
    %c0_i32_0 = arith.constant 0 : i32
    %c0_i32_1 = arith.constant 0 : i32
    return %arg0, %arg1, %c0_i32, %c0_i32_0 : i32, i32, i32, i32
  }
}

</mosaic_0001>

<bundles_post_ra>
// kernel: tpu_custom_call.1
= control target key start
LH: loop header
LB: loop body
LE: loop exit
PB: predicated region body
PF: predicated region fallthrough
CT: control target
= control target key end

     0   :  { %7 = vsyncpa [#allocation3], 0  ;;  %s935_s0 = inlined_call_operand.hbm [shape: f32[2,4,2,128], index: 0, kind: input, shape index: {}]   ;;  %s936_s1 = inlined_call_operand.hbm [shape: f32[2,4,2,128], index: 1, kind: input, shape index: {}]   ;;  %s937_s2 = inlined_call_operand.hbm [shape: f32[2,1,8,128], index: 2, kind: output, shape index: {}]  }
   0x1   :  { %9 = vsyncpa [#allocation3 + $0x1], 0 }
   0x2   :  { %10 = vsyncpa [#allocation6], 0 }
   0x3   :  { %12 = vsyncpa [#allocation6 + $0x1], 0 }
   0x4   :  { %13 = vsyncpa [#allocation4], 0 }
   0x5   :  { %15 = vsyncpa [#allocation4 + $0x1], 0  ;;  %s678_s9 = smov 0   ;;  %s680_s10 = smov 0  }
   0x6   :  { %s682_s11 = smov 0   ;;  %s684_s12 = smov 0  }
   0x7   :  { %s686_s13 = smov 0   ;;  %s688_s14 = smov 0  }
   0x8 LB: > { %s409_s15 = sadd.s32 4294967295, %s656_s14   ;;  %s410_s16 = sadd.s32 4294967294, %s656_s14   ;;  %s656_s14 = sphi %s688_s14, %s21_s14   ;;  %s652_s13 = sphi %s686_s13, %s955_s13   ;;  %s648_s12 = sphi %s684_s12, %s954_s12   ;;  %s644_s11 = sphi %s682_s11, %s953_s11   ;;  %s640_s10 = sphi %s680_s10, %s952_s10   ;;  %s636_s9 = sphi %s678_s9, %s951_s9  }
   0x9   : > { %s33_s17 = sadd.s32 1, %s652_s13  ;;  %s42_s18 = sadd.s32 1, %s644_s11 }
   0xa   : > { %p35_p0 = scmp.ge.s32.totalorder %s33_s17, 2  ;;  %p49_p1 = scmp.ne.s32.totalorder %s644_s11, %s640_s10 }
   0xb   : > { %p50_p2 = scmp.eq.s32.totalorder %s656_s14, 0  ;;  %p55_p3 = scmp.ne.s32.totalorder %s640_s10, %s636_s9 }
   0xc   : > { %s957_s17 = smov (%p35_p0, %s33_s17), 0  ;;  %p56_p5 = scmp.eq.s32.totalorder %s409_s15, 0 }
   0xd   : > { %p719_p4 = por %p50_p2, %p49_p1  ;;  %s37_s20 = ssub.s32 %s652_s13, %s957_s17 }
   0xe   : > { %p109_p6 = scmp.eq.s32.totalorder %s409_s15, 1  ;;  %p40_p7 = scmp.eq.s32.totalorder %s37_s20, 0 }
   0xf   : > { %p725_p8 = por %p56_p5, %p55_p3  ;;  %p115_p10 = scmp.eq.s32.totalorder %s410_s16, 1 }
  0x10   : > { %p729_p9 = por %p109_p6, %p49_p1  ;;  %p448_p13 = scmp.lt.s32.totalorder %s656_s14, 2 }
  0x11   : > { %s941_s21 = scalar_select %p725_p8, 1, 0 }
  0x12   : > { %s942_s22 = scalar_select %p729_p9, 1, 0 }
  0x13   : > { %s734_s23 = scalar_select %p40_p7, %s644_s11, %s42_s18  }
  0x14   : > { %p736_p11 = por %p115_p10, %p55_p3  ;;  %s743_s25 = sand.u32 1, %s644_s11  }
  0x15   : > { %s413_s26 = sshll.u32 %s743_s25, 3  ;;  %s427_s27 = sshll.u32 %s652_s13, 7 }
  0x16   : > { %s943_s24 = scalar_select %p736_p11, 1, 0 }
  0x17   : > { %s752_s30 = scalar_lea.hbm %s935_s0, %s427_s27  ;;  %s139_s3 = scalar_lea.vmem [#allocation2], %s413_s26 }
  0x18   : > { %s147_s4 = sshll.u32 %s139_s3, 4  ;;  %p760_p0 = pnand %p448_p13, %p719_p4  ;;  %s756_s4 = int_to_ptr.vmem [resolvable:$true] %s147_s4 }
  0x19   : > { %s136_s6 = scalar_lea.sflag [#allocation3], %s743_s25  ;;  %s510_s7 = scalar_lea.hbm %s752_s30, 128 }
  0x1a   : > { %p511_p2 = scmp.ne.s32.totalorder %s752_s30, %s510_s7  ;;  %p512_p3 = pneg %p760_p0 }
  0x1b   : > { %s515_s16 = scalar_lea.hbm %s935_s0, 256  ;;  %p516_p4 = scmp.lt.u32.totalorder %s752_s30, %s935_s0 }
  0x1c   : > { %p513_p5 = pnand %p512_p3, %p511_p2  ;;  %p517_p7 = scmp.lt.u32.totalorder %s515_s16, %s510_s7 }
  0x1d   : > { %p519_p13 = scmp.lt.u32.totalorder %s510_s7, %s752_s30 }
  0x1e   : > { %p514_p6 = pneg %p513_p5  ;;  %p518_p10 = por %p517_p7, %p516_p4 }
  0x20   : > { %p520_p12 = por %p519_p13, %p518_p10 }
  0x22   : > { %p521_p1 = pnand %p520_p12, %p514_p6 }
  0x24   : > { %524 = shalt.err (!%p521_p1)
}
  0x25   : > { %s525_s20 = scalar_lea.vmem %s756_s4, 128  ;;  %s658_s28 = smov [#allocation2]  }
  0x26   : > { %p526_p2 = scmp.ne.s32.totalorder %s756_s4, %s525_s20  ;;  %s530_s29 = sshll.u32 %s658_s28, 4  ;;  %s531_s29 = int_to_ptr.vmem [resolvable:$false] %s530_s29 }
  0x27   : > { %s532_s3 = scalar_lea.vmem %s531_s29, 256  ;;  %p533_p9 = scmp.lt.s32.totalorder %s756_s4, %s531_s29 }
  0x28   : > { %p528_p5 = pnand %p526_p2, %p512_p3  ;;  %p534_p4 = scmp.lt.s32.totalorder %s532_s3, %s525_s20 }
  0x2a   : > { %p529_p11 = pneg %p528_p5  ;;  %p535_p7 = por %p534_p4, %p533_p9 }
  0x2c   : > { %p536_p10 = pnand %p535_p7, %p529_p11 }
  0x2e   : > { %539 = shalt.err (!%p536_p10)
}
  0x2f   : > { %s659_s7 = smov 32   ;;  %s660_s8 = smov 2  }
  0x30   : > { %440 = dma.hbm_to_vmem [thread:$0]  (!%p760_p0), %s752_s30, 128, %s756_s4, %s136_s6, %s659_s7, %s659_s7, %s660_s8  }
  0x31   : > { %p177_p9 = scmp.lt.s32.totalorder %s656_s14, 3  ;;  %s802_s18 = scalar_lea.hbm %s936_s1, %s427_s27 }
  0x32   : > { %p945_p11 = scmp.ge.s32.totalorder %s656_s14, 1  ;;  %s161_s20 = scalar_lea.vmem [#allocation5], %s413_s26 }
  0x33   : > { %s169_s28 = sshll.u32 %s161_s20, 4  ;;  %s158_s30 = scalar_lea.sflag [#allocation6], %s743_s25  ;;  %s812_s28 = int_to_ptr.vmem [resolvable:$true] %s169_s28 }
  0x34   : > { %p806_p12 = pnand %p945_p11, %p177_p9  ;;  %s540_s4 = scalar_lea.hbm %s802_s18, 128 }
  0x35   : > { %p541_p1 = scmp.ne.s32.totalorder %s802_s18, %s540_s4  ;;  %s545_s29 = scalar_lea.hbm %s936_s1, 256 }
  0x36   : > { %p546_p2 = scmp.lt.u32.totalorder %s802_s18, %s936_s1  ;;  %p547_p5 = scmp.lt.u32.totalorder %s545_s29, %s540_s4 }
  0x37   : > { %p543_p6 = pnand %p541_p1, %p512_p3  ;;  %p549_p7 = scmp.lt.u32.totalorder %s540_s4, %s802_s18 }
  0x38   : > { %p548_p4 = por %p547_p5, %p546_p2 }
  0x39   : > { %p544_p13 = pneg %p543_p6 }
  0x3a   : > { %p550_p10 = por %p549_p7, %p548_p4 }
  0x3c   : > { %p551_p9 = pnand %p550_p10, %p544_p13 }
  0x3e   : > { %554 = shalt.err (!%p551_p9)
}
  0x3f   : > { %s555_s26 = scalar_lea.vmem %s812_s28, 128  ;;  %s661_s16 = smov [#allocation5]  }
  0x40   : > { %p556_p11 = scmp.ne.s32.totalorder %s812_s28, %s555_s26  ;;  %s560_s20 = sshll.u32 %s661_s16, 4  ;;  %s561_s20 = int_to_ptr.vmem [resolvable:$false] %s560_s20 }
  0x41   : > { %s562_s27 = scalar_lea.vmem %s561_s20, 256  ;;  %p563_p8 = scmp.lt.s32.totalorder %s812_s28, %s561_s20 }
  0x42   : > { %p558_p1 = pnand %p556_p11, %p512_p3  ;;  %p564_p2 = scmp.lt.s32.totalorder %s562_s27, %s555_s26 }
  0x44   : > { %p559_p6 = pneg %p558_p1  ;;  %p565_p5 = por %p564_p2, %p563_p8 }
  0x46   : > { %p566_p4 = pnand %p565_p5, %p559_p6 }
  0x48   : > { %569 = shalt.err (!%p566_p4)
}
  0x49   : > { %443 = dma.hbm_to_vmem [thread:$0]  (!%p760_p0), %s802_s18, 128, %s812_s28, %s158_s30, %s659_s7, %s659_s7, %s660_s8  }
  0x4a   : > { %181 = sbr.rel (%p806_p12) target bundleno = 357 (0x165), region = 28  ;;  %s846_s4 = sand.u32 (!%p806_p12), 1, %s640_s10  }
  0x4b   : > { %s849_s6 = sshll.u32 (!%p806_p12), %s846_s4, 3  ;;  %s184_s5 = scalar_lea.sflag (!%p806_p12), [#allocation3], %s846_s4 }
  0x4c   : > { %s187_s29 = scalar_lea.vmem (!%p806_p12), [#allocation2], %s849_s6  ;;  %p947_p8 = scmp.ne.s32.totalorder (!%p806_p12), %s941_s21, 0 }
  0x51   : > { %623 = dma.done.wait (%p947_p8), %s184_s5, 128  }
  0x52   : > { %625 = vsyncadd (%p947_p8), %s184_s5, 4294967168  ;;  %s193_s25 = scalar_lea.sflag [#allocation6], %s846_s4  ;;  %s859_s7 = scalar_lea.vmem [#allocation5], %s849_s6 }
  0x53   : > { %627 = dma.done.wait (%p947_p8), %s193_s25, 128  }
  0x54   : > { %629 = vsyncadd (%p947_p8), %s193_s25, 4294967168  ;;  %vm230_vm0 = vcmask 1041408   ;;  %v222_v0 = vld [vmem:[%s187_s29] sm:$0x3]  ;;  %v223_v1 = vld [vmem:[%s187_s29 + $0x2] sm:$0x3] }
  0x55   : > { %v224_v2 = vld [vmem:[%s187_s29 + $0x4] sm:$0x3]  ;;  %v225_v3 = vld [vmem:[%s187_s29 + $0x6] sm:$0x3]  ;;  %v231_v4 = vsel %vm230_vm0, %v222_v0, -inf  ;;  %v232_v5 = vsel %vm230_vm0, %v223_v1, -inf }
  0x56   : > { %v233_v6 = vsel %vm230_vm0, %v224_v2, -inf  ;;  %v234_v7 = vsel %vm230_vm0, %v225_v3, -inf  ;;  %v235_v8 = vmax.f32 %v231_v4, %v232_v5  ;;  %v226_v30 = vld [vmem:[%s859_s7] sm:$0x3]  ;;  %v227_v32 = vld [vmem:[%s859_s7 + $0x2] sm:$0x3] }
  0x57   : > { %v236_v9 = vmax.f32 %v233_v6, %v234_v7  ;;  %v228_v33 = vld [vmem:[%s859_s7 + $0x4] sm:$0x3]  ;;  %v229_v34 = vld [vmem:[%s859_s7 + $0x6] sm:$0x3]  ;;  %s221_s21 = scalar_lea.vmem [#allocation7], %s849_s6  ;;  %s424_s18 = sshll.u32 %s648_s12, 7 }
  0x58   : > { %s303_s8 = sshll.u32 %s221_s21, 4  ;;  %s888_s3 = scalar_lea.hbm %s937_s2, %s424_s18  ;;  %s883_s8 = int_to_ptr.vmem [resolvable:$true] %s303_s8 }
  0x59   : > { %v237_v10 = vmax.f32 %v235_v8, %v236_v9  ;;  %s289_s15 = scalar_lea.sflag [#allocation4], %s846_s4  ;;  %s570_s26 = scalar_lea.vmem %s883_s8, 128 }
  0x5a   : > { %p571_p0 = scmp.ne.s32.totalorder %s883_s8, %s570_s26  ;;  %p948_p3 = scmp.ne.s32.totalorder %s942_s22, 0 }
  0x5b   : > { %v238_v11 = vsub.f32 %v222_v0, %v237_v10  ;;  %v239_v12 = vsub.f32 %v223_v1, %v237_v10  ;;  %v240_v13 = vsub.f32 %v224_v2, %v237_v10  ;;  %v241_v14 = vsub.f32 %v225_v3, %v237_v10  ;;  %s662_s12 = smov [#allocation7]  }
  0x5c   : > { %p572_p12 = pnand %p571_p0, %p948_p3  ;;  %s574_s16 = sshll.u32 %s662_s12, 4  ;;  %s575_s16 = int_to_ptr.vmem [resolvable:$false] %s574_s16 }
  0x5d   : > { %v242_v15 = vmul.f32 1.442695, %v238_v11  ;;  %v244_v16 = vmul.f32 1.442695, %v239_v12  ;;  %v246_v17 = vmul.f32 1.442695, %v240_v13  ;;  %p577_p7 = scmp.lt.s32.totalorder %s883_s8, %s575_s16 }
  0x5e   : > { %v248_v18 = vmul.f32 1.442695, %v241_v14  ;;  %p573_p13 = pneg %p572_p12  ;;  %s576_s20 = scalar_lea.vmem %s575_s16, 256 }
  0x5f   : > { %500 = vpow2.f32 %v242_v15  ;;  %p578_p10 = scmp.lt.s32.totalorder %s576_s20, %s570_s26 }
  0x60   : > { %502 = vpow2.f32 %v244_v16 }
  0x61   : > { %504 = vpow2.f32 %v246_v17  ;;  %p579_p9 = por %p578_p10, %p577_p7 }
  0x62   : > { %506 = vpow2.f32 %v248_v18 }
  0x63   : > { %p580_p11 = pnand %p579_p9, %p573_p13 }
  0x69   : > { %v501_v19 = vpop.eup %500 }
  0x6a   : > { %v503_v20 = vpop.eup %502  ;;  %v250_v21 = vsel %vm230_vm0, %v501_v19, 0.0 }
  0x6b   : > { %v505_v22 = vpop.eup %504  ;;  %v251_v23 = vsel %vm230_vm0, %v503_v20, 0.0 }
  0x6c   : > { %v507_v24 = vpop.eup %506  ;;  %v252_v25 = vadd.f32 %v251_v23, %v250_v21  ;;  %v253_v26 = vsel %vm230_vm0, %v505_v22, 0.0 }
  0x6d   : > { %v255_v27 = vsel %vm230_vm0, %v507_v24, 0.0 }
  0x6e   : > { %v254_v28 = vadd.f32 %v253_v26, %v252_v25 }
  0x70   : > { %v256_v29 = vadd.f32 %v255_v27, %v254_v28 }
  0x72   : > { %508 = vrcp.f32 %v256_v29 }
  0x7c   : > { %v509_v31 = vpop.eup %508 }
  0x7d   : > { %v258_v35 = vmul.f32 %v509_v31, %v501_v19  ;;  %v259_v36 = vmul.f32 %v509_v31, %v503_v20  ;;  %v260_v37 = vmul.f32 %v509_v31, %v505_v22  ;;  %v261_v38 = vmul.f32 %v509_v31, %v507_v24 }
  0x7f   : > { %v262_v39 = vsub.f32 %v258_v35, %v226_v30  ;;  %v263_v40 = vsub.f32 %v259_v36, %v227_v32  ;;  %v264_v41 = vsub.f32 %v260_v37, %v228_v33  ;;  %v265_v42 = vsub.f32 %v261_v38, %v229_v34 }
  0x81   : > { %v266_v43 = vmul.f32 %v262_v39, %v262_v39  ;;  %v267_v44 = vmul.f32 %v263_v40, %v263_v40  ;;  %v268_v45 = vmul.f32 %v264_v41, %v264_v41  ;;  %v269_v46 = vmul.f32 %v265_v42, %v265_v42 }
  0x83   : > { %v270_v47 = vsel %vm230_vm0, %v266_v43, 0.0  ;;  %v271_v48 = vsel %vm230_vm0, %v267_v44, 0.0  ;;  %v273_v49 = vsel %vm230_vm0, %v268_v45, 0.0  ;;  %v275_v51 = vsel %vm230_vm0, %v269_v46, 0.0 }
  0x84   : > { %v272_v50 = vadd.f32 %v271_v48, %v270_v47 }
  0x86   : > { %v274_v52 = vadd.f32 %v273_v49, %v272_v50 }
  0x88   : > { %v276_v53 = vadd.f32 %v275_v51, %v274_v52 }
  0x8a   : > { %277 = vadd.xlane.f32.xlu0 %v276_v53 }
 0x117   : > { %v278_v54 = vpop.xlane.xlu0 %277 }
 0x118   : > { %v279_v55 = vrot.slane %v278_v54, 4 }
 0x11a   : > { %v280_v56 = vadd.f32 %v279_v55, %v278_v54 }
 0x11c   : > { %v281_v57 = vrot.slane %v280_v56, 2 }
 0x11e   : > { %v282_v58 = vadd.f32 %v281_v57, %v280_v56 }
 0x120   : > { %v283_v59 = vrot.slane %v282_v58, 1 }
 0x122   : > { %v284_v60 = vadd.f32 %v283_v59, %v282_v58 }
 0x124   : > { %429 = vpush %v284_v60 }
 0x155   : > { %s430_s19 = spop %429 }
 0x156   : > { %v286_v61 = vstv %s430_s19 }
 0x157   : > { %287 = vst [vmem:[%s221_s21] sm:$0xff] %v286_v61 }
 0x158   : > { %583 = shalt.err (!%p580_p11)
}
 0x159   : > { %s584_s27 = scalar_lea.hbm %s888_s3, 128  ;;  %s588_s5 = scalar_lea.hbm %s937_s2, 256 }
 0x15a   : > { %p585_p1 = scmp.ne.s32.totalorder %s888_s3, %s584_s27  ;;  %p589_p5 = scmp.lt.u32.totalorder %s888_s3, %s937_s2 }
 0x15b   : > { %p590_p4 = scmp.lt.u32.totalorder %s588_s5, %s584_s27  ;;  %p592_p0 = scmp.lt.u32.totalorder %s584_s27, %s888_s3 }
 0x15c   : > { %p586_p6 = pnand %p585_p1, %p948_p3 }
 0x15d   : > { %p591_p8 = por %p590_p4, %p589_p5 }
 0x15e   : > { %p587_p2 = pneg %p586_p6 }
 0x15f   : > { %p593_p12 = por %p592_p0, %p591_p8 }
 0x161   : > { %p594_p13 = pnand %p593_p12, %p587_p2 }
 0x163   : > { %597 = shalt.err (!%p594_p13)
}
 0x164   : > { %435 = dma.vmem_to_hbm [thread:$0]  (%p948_p3), %s883_s8, 128, %s888_s3, %s289_s15  }
 0x165 PF: > { %s315_s7 = sand.u32 1, %s636_s9   ;;  %p949_p7 = scmp.ne.s32.totalorder %s943_s24, 0 }
 0x166   : > { %p950_p10 = scmp.ge.s32.totalorder %s656_s14, 2  ;;  %s316_s21 = scalar_lea.sflag [#allocation4], %s315_s7 }
 0x168   : > { %p445_p9 = pnand %p950_p10, %p949_p7 }
 0x16a   : > { %631 = dma.done.wait (!%p445_p9), %s316_s21, 128  }
 0x16b   : > { %633 = vsyncadd (!%p445_p9), %s316_s21, 4294967168  ;;  %s21_s14 = sadd.s32 1, %s656_s14   ;;  %s951_s9 = smov %s640_s10 }
 0x16c   : > { %p18_p11 = scmp.ge.s32.totalorder %s21_s14, 4   ;;  %s952_s10 = smov %s644_s11 }
 0x16d   : > { %s953_s11 = smov %s734_s23  ;;  %s954_s12 = smov %s652_s13 }
 0x16e   : > { %s955_s13 = smov %s957_s17  ;;  %20 = sbr.rel (!%p18_p11) target bundleno = 8 (0x8), region = 86 }
 0x175   :  { %321 = vsyncpa [#allocation3], 1 }
 0x176   :  { %323 = vsyncpa [#allocation3 + $0x1], 1 }
 0x177   :  { %324 = vsyncpa [#allocation6], 1 }
 0x178   :  { %326 = vsyncpa [#allocation6 + $0x1], 1 }
 0x179   :  { %327 = vsyncpa [#allocation4], 1 }
 0x17a   :  { %329 = vsyncpa [#allocation4 + $0x1], 1 }

</bundles_post_ra>
